<compile_context>
chip_gen: v7x
topology: tpu7x:2x2x1
jax: 0.10.0
libtpu: 0.0.40
codegen_flags: <defaults>
</compile_context>

<pallas_src>
import functools

import jax
import jax.numpy as jnp
import numpy as np
from jax.experimental import pallas as pl
from jax.experimental.pallas import tpu as pltpu

LANE = 128      # vreg lane width (last dim)
SUBLANE = 8     # vreg sublane width (second-to-last dim)


def _round_up(n, m):
    return ((n + m - 1) // m) * m


def _device_kind():
    try:
        return jax.devices()[0].device_kind.lower()
    except Exception:  # pragma: no cover
        return ""


def _vmem_limit_bytes(kind):
    # v7x: 64 MiB physical per TC -> stay well under.  v4/v5e/v6e: 128 MiB physical.
    if "v7" in kind:
        return 48 * 1024 * 1024
    if any(g in kind for g in ("v4", "v5", "v6")):
        return 96 * 1024 * 1024
    return 48 * 1024 * 1024  # unknown generation: conservative


def _fn_net_kernel(x_ref, w1_ref, b1_ref, w2_ref, b2_ref, w3_ref, b3_ref, o_ref,
                   *, bf16_tanh):
    # x tile: (TB, Din) bf16 streamed from HBM; weights bf16 / biases f32, VMEM-resident.
    x = x_ref[...]

    # layer 1: tanh(x @ W1 + b1)
    a1 = jnp.dot(x, w1_ref[...], preferred_element_type=jnp.float32) + b1_ref[...]
    h = jnp.tanh(a1.astype(jnp.bfloat16)) if bf16_tanh else jnp.tanh(a1).astype(jnp.bfloat16)

    # layer 2: tanh(h @ W2 + b2)
    a2 = jnp.dot(h, w2_ref[...], preferred_element_type=jnp.float32) + b2_ref[...]
    h = jnp.tanh(a2.astype(jnp.bfloat16)) if bf16_tanh else jnp.tanh(a2).astype(jnp.bfloat16)

    # output layer: h @ W3 + b3   (no activation, f32 out)
    o_ref[...] = (
        jnp.dot(h, w3_ref[...], preferred_element_type=jnp.float32) + b3_ref[...]
    ).astype(o_ref.dtype)


def prepare_fn_net_params(params):
    """One-time padding + bf16 cast of the weights (hoisted off the forward path).

    Weights are stored (in_features, out_features); only the hidden dim is padded to a
    lane multiple (zero padding -> padded hidden columns stay exactly zero through
    bias + tanh and the zero weight rows of the next layer).  Din / Dout stay unpadded.
    """
    w1, b1 = params["w1"], params["b1"]
    w2, b2 = params["w2"], params["b2"]
    w3, b3 = params["w3"], params["b3"]
    Din, hid = w1.shape
    Dout = w3.shape[1]
    hid_p = _round_up(hid, LANE)   # for large, MXU-bound hid on v6e/v7x, 256 is better

    bf16, f32 = jnp.bfloat16, jnp.float32
    w1p = jnp.zeros((Din, hid_p), bf16).at[:, :hid].set(w1.astype(bf16))
    w2p = jnp.zeros((hid_p, hid_p), bf16).at[:hid, :hid].set(w2.astype(bf16))
    w3p = jnp.zeros((hid_p, Dout), bf16).at[:hid, :].set(w3.astype(bf16))
    b1p = jnp.zeros((1, hid_p), f32).at[:, :hid].set(b1.astype(f32))
    b2p = jnp.zeros((1, hid_p), f32).at[:, :hid].set(b2.astype(f32))
    b3p = b3.astype(f32).reshape(1, Dout)
    return {"w1": w1p, "b1": b1p, "w2": w2p, "b2": b2p, "w3": w3p, "b3": b3p}


def fn_net_forward(x, prep, *, block_rows=512):
    """x: (B, Din) f32; prep: output of prepare_fn_net_params (padded bf16/f32)."""
    w1p, b1p = prep["w1"], prep["b1"]
    w2p, b2p = prep["w2"], prep["b2"]
    w3p, b3p = prep["w3"], prep["b3"]

    B, Din = x.shape
    assert w1p.shape[0] == Din
    Dout = w3p.shape[1]

    # Batch tiling: at least 2 grid steps (pipelining + v7x megacore) while keeping the
    # padded batch as small as possible (round each tile up to the sublane only).
    n_tiles = max(2, pl.cdiv(B, block_rows))
    TB = _round_up(pl.cdiv(B, n_tiles), SUBLANE)
    B_p = _round_up(B, TB)

    # Stream x as bf16 (MXU operand dtype) -> half the input HBM bytes.
    x_bf = x.astype(jnp.bfloat16)
    if B_p != B:
        x_bf = jnp.pad(x_bf, ((0, B_p - B), (0, 0)))

    kind = _device_kind()
    bf16_tanh = ("v6" in kind) or ("v7" in kind)   # v5e has no bf16 EUP/VPU
    kernel = functools.partial(_fn_net_kernel, bf16_tanh=bf16_tanh)

    def const_spec(a):
        # Full-array block + constant index_map -> DMA'd once, VMEM-resident across the
        # whole grid.  For very large hid on v7x, single-buffer these with
        # pipeline_mode=pl.Buffered(1) (and/or tile hid with an f32 accumulator);
        # unnecessary at the sizes exercised here.
        return pl.BlockSpec(a.shape, lambda i: (0, 0))

    out = pl.pallas_call(
        kernel,
        out_shape=jax.ShapeDtypeStruct((B_p, Dout), jnp.float32),
        grid=(B_p // TB,),
        in_specs=[
            pl.BlockSpec((TB, Din), lambda i: (i, 0)),   # x: batch-tiled, unpadded Din
            const_spec(w1p), const_spec(b1p),
            const_spec(w2p), const_spec(b2p),
            const_spec(w3p), const_spec(b3p),
        ],
        out_specs=pl.BlockSpec((TB, Dout), lambda i: (i, 0)),  # unpadded Dout
        compiler_params=pltpu.CompilerParams(
            dimension_semantics=("parallel",),
            vmem_limit_bytes=_vmem_limit_bytes(kind),
        ),
    )(x_bf, w1p, b1p, w2p, b2p, w3p, b3p)

    # Only slice when batch rows were padded; no feature-dim slice / extra copy.
    return out if B_p == B else out[:B]


def init_fn_net_params(key, input_dim, output_dim, hid_size):
    """PyTorch-style init U(-1/sqrt(fan_in), +1/sqrt(fan_in)).

    Weights stored pre-transposed as (in_features, out_features), biases as (1, out).
    """
    ks = jax.random.split(key, 6)

    def lin(kw, kb, fan_in, fan_out):
        bound = 1.0 / np.sqrt(fan_in)
        w = jax.random.uniform(kw, (fan_in, fan_out), jnp.float32, -bound, bound)
        b = jax.random.uniform(kb, (1, fan_out), jnp.float32, -bound, bound)
        return w, b

    w1, b1 = lin(ks[0], ks[1], input_dim, hid_size)
    w2, b2 = lin(ks[2], ks[3], hid_size, hid_size)
    w3, b3 = lin(ks[4], ks[5], hid_size, output_dim)
    return {"w1": w1, "b1": b1, "w2": w2, "b2": b2, "w3": w3, "b3": b3}


def fn_net_reference(x, params):
    h = jnp.tanh(x @ params["w1"] + params["b1"])
    h = jnp.tanh(h @ params["w2"] + params["b2"])
    return h @ params["w3"] + params["b3"]


if __name__ == "__main__":
    input_dim, output_dim, hid_size = 4, 2, 32
    batch = 8

    key = jax.random.PRNGKey(0)
    k_x, k_p = jax.random.split(key)
    x = jax.random.normal(k_x, (batch, input_dim), jnp.float32)
    params = init_fn_net_params(k_p, input_dim, output_dim, hid_size)

    # One-time weight preparation (padding + bf16 cast) — off the per-call path.
    prep = prepare_fn_net_params(params)

    out = fn_net_forward(x, prep)
    out = jax.block_until_ready(out)

    ref = fn_net_reference(x, params)
    # bf16 matmul operands (f32 accumulation) -> loosened tolerance vs f32 reference.
    np.testing.assert_allclose(np.asarray(out), np.asarray(ref), rtol=2e-2, atol=2e-2)

    print("KERNEL_OK")
</pallas_src>

<mosaic_0001>
module attributes {stable_mosaic.version = 11 : i64} {
  func.func @_fn_net_kernel(%arg0: i32, %arg1: memref<8x4xbf16, #tpu.memory_space<vmem>>, %arg2: memref<4x128xbf16, #tpu.memory_space<vmem>>, %arg3: memref<1x128xf32, #tpu.memory_space<vmem>>, %arg4: memref<128x128xbf16, #tpu.memory_space<vmem>>, %arg5: memref<1x128xf32, #tpu.memory_space<vmem>>, %arg6: memref<128x2xbf16, #tpu.memory_space<vmem>>, %arg7: memref<1x2xf32, #tpu.memory_space<vmem>>, %arg8: memref<8x2xf32, #tpu.memory_space<vmem>>) attributes {dimension_semantics = [#tpu.dimension_semantics<parallel>], iteration_bounds = array<i64: 1>, scalar_prefetch = 0 : i64, scratch_operands = 0 : i64, tpu.core_type = #tpu.core_type<tc>, window_params = [{transform_indices = @transform_0, window_bounds = array<i64: 8, 4>}, {pipeline_mode = #tpu.pipeline_mode<synchronous>, transform_indices = @transform_1, window_bounds = array<i64: 4, 128>}, {pipeline_mode = #tpu.pipeline_mode<synchronous>, transform_indices = @transform_2, window_bounds = array<i64: 1, 128>}, {pipeline_mode = #tpu.pipeline_mode<synchronous>, transform_indices = @transform_3, window_bounds = array<i64: 128, 128>}, {pipeline_mode = #tpu.pipeline_mode<synchronous>, transform_indices = @transform_4, window_bounds = array<i64: 1, 128>}, {pipeline_mode = #tpu.pipeline_mode<synchronous>, transform_indices = @transform_5, window_bounds = array<i64: 128, 2>}, {pipeline_mode = #tpu.pipeline_mode<synchronous>, transform_indices = @transform_6, window_bounds = array<i64: 1, 2>}, {transform_indices = @transform_7, window_bounds = array<i64: 8, 2>}]} {
    %c0 = arith.constant 0 : index
    %c0_0 = arith.constant 0 : index
    %0 = vector.load %arg1[%c0, %c0_0] : memref<8x4xbf16, #tpu.memory_space<vmem>>, vector<8x4xbf16>
    %c0_1 = arith.constant 0 : index
    %c0_2 = arith.constant 0 : index
    %1 = vector.load %arg2[%c0_1, %c0_2] : memref<4x128xbf16, #tpu.memory_space<vmem>>, vector<4x128xbf16>
    %cst = arith.constant dense<0.000000e+00> : vector<8x128xf32>
    %2 = tpu.matmul %0, %1, %cst {dimension_numbers = #tpu.dot_dimension_numbers<[1], [0], [0], [1], [0, 0, 1, 1], [], []>} : vector<8x4xbf16>, vector<4x128xbf16>, vector<8x128xf32> -> vector<8x128xf32>
    %c0_3 = arith.constant 0 : index
    %c0_4 = arith.constant 0 : index
    %3 = vector.load %arg3[%c0_3, %c0_4] : memref<1x128xf32, #tpu.memory_space<vmem>>, vector<1x128xf32>
    %4 = vector.broadcast %3 : vector<1x128xf32> to vector<8x128xf32>
    %5 = arith.addf %2, %4 : vector<8x128xf32>
    %6 = math.tanh %5 : vector<8x128xf32>
    %7 = arith.truncf %6 : vector<8x128xf32> to vector<8x128xbf16>
    %c0_5 = arith.constant 0 : index
    %c0_6 = arith.constant 0 : index
    %8 = vector.load %arg4[%c0_5, %c0_6] : memref<128x128xbf16, #tpu.memory_space<vmem>>, vector<128x128xbf16>
    %cst_7 = arith.constant dense<0.000000e+00> : vector<8x128xf32>
    %9 = tpu.matmul %7, %8, %cst_7 {dimension_numbers = #tpu.dot_dimension_numbers<[1], [0], [0], [1], [0, 0, 1, 1], [], []>} : vector<8x128xbf16>, vector<128x128xbf16>, vector<8x128xf32> -> vector<8x128xf32>
    %c0_8 = arith.constant 0 : index
    %c0_9 = arith.constant 0 : index
    %10 = vector.load %arg5[%c0_8, %c0_9] : memref<1x128xf32, #tpu.memory_space<vmem>>, vector<1x128xf32>
    %11 = vector.broadcast %10 : vector<1x128xf32> to vector<8x128xf32>
    %12 = arith.addf %9, %11 : vector<8x128xf32>
    %13 = math.tanh %12 : vector<8x128xf32>
    %14 = arith.truncf %13 : vector<8x128xf32> to vector<8x128xbf16>
    %c0_10 = arith.constant 0 : index
    %c0_11 = arith.constant 0 : index
    %15 = vector.load %arg6[%c0_10, %c0_11] : memref<128x2xbf16, #tpu.memory_space<vmem>>, vector<128x2xbf16>
    %cst_12 = arith.constant dense<0.000000e+00> : vector<8x2xf32>
    %16 = tpu.matmul %14, %15, %cst_12 {dimension_numbers = #tpu.dot_dimension_numbers<[1], [0], [0], [1], [0, 0, 1, 1], [], []>} : vector<8x128xbf16>, vector<128x2xbf16>, vector<8x2xf32> -> vector<8x2xf32>
    %c0_13 = arith.constant 0 : index
    %c0_14 = arith.constant 0 : index
    %17 = vector.load %arg7[%c0_13, %c0_14] : memref<1x2xf32, #tpu.memory_space<vmem>>, vector<1x2xf32>
    %18 = vector.broadcast %17 : vector<1x2xf32> to vector<8x2xf32>
    %19 = arith.addf %16, %18 : vector<8x2xf32>
    %c0_15 = arith.constant 0 : index
    %c0_16 = arith.constant 0 : index
    %20 = vector.load %arg8[%c0_15, %c0_16] : memref<8x2xf32, #tpu.memory_space<vmem>>, vector<8x2xf32>
    tpu.vector_store %arg8[%c0_15, %c0_16], %19 {strides = array<i32>} : memref<8x2xf32, #tpu.memory_space<vmem>>, vector<8x2xf32>,
    return
  }
  func.func @transform_0(%arg0: i32) -> (i32, i32) {
    %c0_i32 = arith.constant 0 : i32
    %c0_i32_0 = arith.constant 0 : i32
    return %arg0, %c0_i32 : i32, i32
  }
  func.func @transform_1(%arg0: i32) -> (i32, i32) {
    %c0_i32 = arith.constant 0 : i32
    %c0_i32_0 = arith.constant 0 : i32
    %c0_i32_1 = arith.constant 0 : i32
    return %c0_i32, %c0_i32_0 : i32, i32
  }
  func.func @transform_2(%arg0: i32) -> (i32, i32) {
    %c0_i32 = arith.constant 0 : i32
    %c0_i32_0 = arith.constant 0 : i32
    %c0_i32_1 = arith.constant 0 : i32
    return %c0_i32, %c0_i32_0 : i32, i32
  }
  func.func @transform_3(%arg0: i32) -> (i32, i32) {
    %c0_i32 = arith.constant 0 : i32
    %c0_i32_0 = arith.constant 0 : i32
    %c0_i32_1 = arith.constant 0 : i32
    return %c0_i32, %c0_i32_0 : i32, i32
  }
  func.func @transform_4(%arg0: i32) -> (i32, i32) {
    %c0_i32 = arith.constant 0 : i32
    %c0_i32_0 = arith.constant 0 : i32
    %c0_i32_1 = arith.constant 0 : i32
    return %c0_i32, %c0_i32_0 : i32, i32
  }
  func.func @transform_5(%arg0: i32) -> (i32, i32) {
    %c0_i32 = arith.constant 0 : i32
    %c0_i32_0 = arith.constant 0 : i32
    %c0_i32_1 = arith.constant 0 : i32
    return %c0_i32, %c0_i32_0 : i32, i32
  }
  func.func @transform_6(%arg0: i32) -> (i32, i32) {
    %c0_i32 = arith.constant 0 : i32
    %c0_i32_0 = arith.constant 0 : i32
    %c0_i32_1 = arith.constant 0 : i32
    return %c0_i32, %c0_i32_0 : i32, i32
  }
  func.func @transform_7(%arg0: i32) -> (i32, i32) {
    %c0_i32 = arith.constant 0 : i32
    %c0_i32_0 = arith.constant 0 : i32
    return %arg0, %c0_i32 : i32, i32
  }
}

</mosaic_0001>

<bundles_post_ra>
// kernel: tpu_custom_call.1
= control target key start
LH: loop header
LB: loop body
LE: loop exit
PB: predicated region body
PF: predicated region fallthrough
CT: control target
= control target key end

     0   :  { %vm40_vm0 = vcmask 1041408   ;;  %v424_v0 = vmov 0.0   ;;  %vm425_vm1 = vmmov 0   ;;  %vm36_vm2 = vcmask 31744   ;;  %s552_s1 = inlined_call_operand.vmem [shape: bf16[4,128], index: 1, kind: input, shape index: {}]   ;;  %s553_s0 = inlined_call_operand.vmem [shape: bf16[8,4], index: 0, kind: input, shape index: {}]   ;;  %s554_s3 = inlined_call_operand.vmem [shape: bf16[128,128], index: 3, kind: input, shape index: {}]   ;;  %s555_s5 = inlined_call_operand.vmem [shape: bf16[128,2], index: 5, kind: input, shape index: {}]   ;;  %s556_s2 = inlined_call_operand.vmem [shape: f32[1,128], index: 2, kind: input, shape index: {}]   ;;  %s557_s4 = inlined_call_operand.vmem [shape: f32[1,128], index: 4, kind: input, shape index: {}]   ;;  %s558_s6 = inlined_call_operand.vmem [shape: f32[1,2], index: 6, kind: input, shape index: {}]   ;;  %s559_s7 = inlined_call_operand.vmem [shape: f32[8,2], index: 7, kind: output, shape index: {}]  }
   0x1   :  { %356 = vmatprep.subr.bf16.mxu0 %v424_v0  ;;  %v28_v1 = vld [vmem:[%s552_s1] sm:$0x3]  ;;  %358 = vmatprep.mubr.msk.bf16.mxu0 %vm425_vm1, %v424_v0  ;;  %v405_v5 = vld [vmem:[%s554_s3 + $0x8] sm:$0xff]   ;;  %v406_v6 = vld [vmem:[%s554_s3 + $0x10] sm:$0xff]   ;;  %vm310_vm3 = vcmask 15360  }
   0x2   :  { %v42_v2 = vsel %vm40_vm0, %v28_v1, 0  ;;  %362 = vmatprep.subr.bf16.mxu1 %v424_v0  ;;  %v404_v3 = vld [vmem:[%s554_s3] sm:$0xff]   ;;  %378 = vmatprep.mubr.msk.bf16.mxu1 %vm425_vm1, %v424_v0  ;;  %v407_v7 = vld [vmem:[%s554_s3 + $0x18] sm:$0xff]   ;;  %v409_v9 = vld [vmem:[%s554_s3 + $0x28] sm:$0xff]  }
   0x3   :  { %357 = vmatpush3.bf16.msra.mxu0 %v42_v2  ;;  %v27_v4 = vld [vmem:[%s553_s0] sm:$0xf]  ;;  %363 = vmatpush3.bf16.msra.mxu1 %v404_v3  ;;  %v410_v10 = vld [vmem:[%s554_s3 + $0x30] sm:$0xff]   ;;  %v411_v11 = vld [vmem:[%s554_s3 + $0x38] sm:$0xff]  }
   0x4   :  { %382 = vmatprep.subr.bf16.mxu0 %v424_v0  ;;  %364 = vmatprep.subr.bf16.mxu1 %v424_v0  ;;  %v408_v8 = vld [vmem:[%s554_s3 + $0x20] sm:$0xff]   ;;  %v413_v13 = vld [vmem:[%s555_s5 + $0x8] sm:$0xff]   ;;  %v414_v14 = vld [vmem:[%s555_s5 + $0x10] sm:$0xff]  }
   0x5   :  { %v412_v12 = vld [vmem:[%s555_s5] sm:$0xff]   ;;  %v415_v15 = vld [vmem:[%s555_s5 + $0x18] sm:$0xff]   ;;  %v417_v25 = vld [vmem:[%s555_s5 + $0x28] sm:$0xff]  }
   0x6   :  { %359 = vmatmul.mubr.msk.bf16.vlgmr.msra.gmra.mrb[0].mxu0 %vm36_vm2, %v27_v4  ;;  %v316_v16 = vld [vmem:[%s556_s2] ss:$0 sm:$0xff]  ;;  %v418_v26 = vld [vmem:[%s555_s5 + $0x30] sm:$0xff]   ;;  %v419_v27 = vld [vmem:[%s555_s5 + $0x38] sm:$0xff]  }
   0x7   :  { %398 = vmatprep.mubr.msk.bf16.mxu0 %vm425_vm1, %v424_v0  ;;  %365 = vmatpush3.bf16.msra.mxu1 %v405_v5  ;;  %v416_v24 = vld [vmem:[%s555_s5 + $0x20] sm:$0xff]  }
   0x8   :  { %366 = vmatprep.subr.bf16.mxu1 %v424_v0  ;;  %383 = vmatpush3.bf16.msra.mxu0 %v412_v12  ;;  %v318_v28 = vld [vmem:[%s557_s4] ss:$0 sm:$0xff] }
   0x9   :  { %384 = vmatprep.subr.bf16.mxu0 %v424_v0  ;;  %v327_v36 = vld [vmem:[%s558_s6] ss:$0 sm:$0xff] }
   0xb   :  { %367 = vmatpush3.bf16.msra.mxu1 %v406_v6 }
   0xc   :  { %368 = vmatprep.subr.bf16.mxu1 %v424_v0  ;;  %385 = vmatpush3.bf16.msra.mxu0 %v413_v13 }
   0xd   :  { %386 = vmatprep.subr.bf16.mxu0 %v424_v0 }
   0xf   :  { %369 = vmatpush3.bf16.msra.mxu1 %v407_v7 }
  0x10   :  { %370 = vmatprep.subr.bf16.mxu1 %v424_v0  ;;  %387 = vmatpush3.bf16.msra.mxu0 %v414_v14 }
  0x11   :  { %388 = vmatprep.subr.bf16.mxu0 %v424_v0 }
  0x13   :  { %371 = vmatpush3.bf16.msra.mxu1 %v408_v8 }
  0x14   :  { %372 = vmatprep.subr.bf16.mxu1 %v424_v0  ;;  %389 = vmatpush3.bf16.msra.mxu0 %v415_v15 }
  0x15   :  { %390 = vmatprep.subr.bf16.mxu0 %v424_v0 }
  0x17   :  { %373 = vmatpush3.bf16.msra.mxu1 %v409_v9 }
  0x18   :  { %374 = vmatprep.subr.bf16.mxu1 %v424_v0  ;;  %391 = vmatpush3.bf16.msra.mxu0 %v416_v24 }
  0x19   :  { %392 = vmatprep.subr.bf16.mxu0 %v424_v0 }
  0x1b   :  { %375 = vmatpush3.bf16.msra.mxu1 %v410_v10 }
  0x1c   :  { %376 = vmatprep.subr.bf16.mxu1 %v424_v0  ;;  %393 = vmatpush3.bf16.msra.mxu0 %v417_v25 }
  0x1d   :  { %394 = vmatprep.subr.bf16.mxu0 %v424_v0 }
  0x1f   :  { %377 = vmatpush3.bf16.msra.mxu1 %v411_v11 }
  0x20   :  { %395 = vmatpush3.bf16.msra.mxu0 %v418_v26 }
  0x21   :  { %396 = vmatprep.subr.bf16.mxu0 %v424_v0 }
  0x24   :  { %397 = vmatpush3.bf16.msra.mxu0 %v419_v27 }
  0xd9   :  { %v78_v17 = vpop.f32.mrb[0].mxu0 }
  0xda   :  { %v79_v18 = vadd.f32 %v316_v16, %v78_v17  ;;  %v360_v19 = vpop.f32.mrb[1].mxu0 }
  0xdb   :  { %v81_v20 = vpop.f32.mrb[2].mxu0 }
  0xdc   :  { %420 = vtanh.f32 %v79_v18  ;;  %v361_v21 = vpop.f32.mrb[3].mxu0 }
  0xe6   :  { %v421_v22 = vpop.eup %420 }
  0xe7   :  { %v85_v23 = vpack.c.bf16 %v421_v22, %v421_v22 }
  0xe9   :  { %379 = vmatmul.mubr.bf16.vlgmr.msra.gmra.mrb[0].mxu1 %v85_v23 }
 0x1bc   :  { %v191_v29 = vpop.f32.mrb[0].mxu1 }
 0x1bd   :  { %v192_v30 = vadd.f32 %v318_v28, %v191_v29  ;;  %v380_v31 = vpop.f32.mrb[1].mxu1 }
 0x1be   :  { %v194_v32 = vpop.f32.mrb[2].mxu1 }
 0x1bf   :  { %422 = vtanh.f32 %v192_v30  ;;  %v381_v33 = vpop.f32.mrb[3].mxu1 }
 0x1c9   :  { %v423_v34 = vpop.eup %422 }
 0x1ca   :  { %v198_v35 = vpack.c.bf16 %v423_v34, %v423_v34 }
 0x1cc   :  { %399 = vmatmul.mubr.bf16.vlgmr.msra.gmra.mrb[4].mxu0 %v198_v35 }
 0x29f   :  { %v304_v37 = vpop.f32.mrb[4].mxu0 }
 0x2a0   :  { %v305_v38 = vadd.f32 %v327_v36, %v304_v37  ;;  %v400_v39 = vpop.f32.mrb[5].mxu0 }
 0x2a1   :  { %v307_v40 = vpop.f32.mrb[6].mxu0 }
 0x2a2   :  { %311 = vst.msk [vmem:[%s559_s7] sm:$0xff] %vm310_vm3, %v305_v38  ;;  %v401_v41 = vpop.f32.mrb[7].mxu0 }

</bundles_post_ra>
